<compile_context>
chip_gen: v6e
topology: v6e:2x2x1
jax: 0.10.0
libtpu: 0.0.40
codegen_flags: <defaults>
</compile_context>

<pallas_src>
import functools

import jax
import jax.numpy as jnp
from jax import lax
from jax.experimental import pallas as pl
from jax.experimental.pallas import tpu as pltpu


def _round_up(x, m):
    return ((x + m - 1) // m) * m


def _cdiv(a, b):
    return (a + b - 1) // b


def _mlp_kernel(x_ref, w1_ref, b1_ref, w2_ref, b2_ref, o_ref, *,
                compute_dtype, precision):
    # In-kernel cast of x (no-op on the f32 path); feeds the MXU.
    x = x_ref[...].astype(compute_dtype)
    # fc1: (TB, D_in) @ (D_in, H) with f32 accumulation.
    h = jnp.dot(x, w1_ref[...],
                preferred_element_type=jnp.float32, precision=precision)
    # bias + ReLU on the f32 accumulator (VPU slot has slack under the MXU).
    h = jnp.maximum(h + b1_ref[...], 0.0)
    # fc2: (TB, H) @ (H, D_out) with f32 accumulation.
    out = jnp.dot(h.astype(w2_ref.dtype), w2_ref[...],
                  preferred_element_type=jnp.float32, precision=precision)
    o_ref[...] = (out + b2_ref[...]).astype(o_ref.dtype)


def prepare_params(w1, b1, w2, b2, *, compute_dtype=jnp.bfloat16):
    """One-time parameter prep (cast/reshape), hoisted out of the per-call path.

    Weights are stored as (in_features, out_features) so the kernel computes
    x @ W, matching PyTorch's fc(x) = x @ W.T with W of shape (out, in).
    """
    return (w1.astype(compute_dtype),
            b1.reshape(1, -1).astype(jnp.float32),
            w2.astype(compute_dtype),
            b2.reshape(1, -1).astype(jnp.float32))


def multilabel_net_apply(x, w1c, b1r, w2c, b2r, *,
                         out_dtype=None, tile_b_max=1024):
    """Forward pass with already-prepared params (see prepare_params).

    x: (B, D_in) in its native dtype; w1c: (D_in, H); b1r: (1, H) f32;
    w2c: (H, D_out); b2r: (1, D_out) f32.  Returns (B, D_out) in out_dtype
    (defaults to the weights' compute dtype).
    """
    B, D_in = x.shape
    H = w1c.shape[1]
    D_out = w2c.shape[1]
    compute_dtype = w1c.dtype
    if out_dtype is None:
        out_dtype = compute_dtype
    precision = (lax.Precision.HIGHEST
                 if jnp.dtype(compute_dtype) == jnp.dtype(jnp.float32)
                 else lax.Precision.DEFAULT)

    # --- Batch tiling -------------------------------------------------------
    # Sublane constraint: tile_b must be a multiple of 8.
    B8 = _round_up(max(B, 8), 8)
    n_tiles = max(1, _cdiv(B8, tile_b_max))
    # Large batches: force >= 2 grid steps so "parallel" can use both v7x TCs.
    if n_tiles == 1 and B8 >= 512:
        n_tiles = 2
    # Roughly equal tiles -> last-tile padding waste stays small.
    tile_b = _round_up(_cdiv(B8, n_tiles), 8)
    B_p = _round_up(B8, tile_b)
    grid = (B_p // tile_b,)

    # Pad x (native dtype) only if actually needed; common aligned case is a
    # zero-copy pass-through.
    if B_p != B:
        xd = jnp.zeros((B_p, D_in), x.dtype).at[:B].set(x)
    else:
        xd = x

    x_itemsize = jnp.dtype(x.dtype).itemsize
    w_itemsize = jnp.dtype(compute_dtype).itemsize
    o_itemsize = jnp.dtype(out_dtype).itemsize
    flops = 2 * B_p * (D_in * H + H * D_out)
    bytes_accessed = (B_p * D_in * x_itemsize
                      + (D_in * H + H * D_out) * w_itemsize
                      + (H + D_out) * 4
                      + B_p * D_out * o_itemsize)

    kernel = functools.partial(_mlp_kernel,
                               compute_dtype=compute_dtype,
                               precision=precision)

    out = pl.pallas_call(
        kernel,
        out_shape=jax.ShapeDtypeStruct((B_p, D_out), out_dtype),
        grid=grid,
        in_specs=[
            # x streamed per batch tile (double-buffered by the pipeline).
            pl.BlockSpec((tile_b, D_in), lambda i: (i, 0)),
            # Weights / biases: constant index_map -> resident across steps.
            pl.BlockSpec((D_in, H), lambda i: (0, 0)),
            pl.BlockSpec((1, H), lambda i: (0, 0)),
            pl.BlockSpec((H, D_out), lambda i: (0, 0)),
            pl.BlockSpec((1, D_out), lambda i: (0, 0)),
        ],
        out_specs=pl.BlockSpec((tile_b, D_out), lambda i: (i, 0)),
        compiler_params=pltpu.CompilerParams(
            dimension_semantics=("parallel",),
        ),
        cost_estimate=pl.CostEstimate(
            flops=flops, transcendentals=0, bytes_accessed=bytes_accessed),
    )(xd, w1c, b1r, w2c, b2r)

    return out if B_p == B else out[:B]


def multilabel_net_forward(x, w1, b1, w2, b2, *,
                           compute_dtype=jnp.bfloat16, out_dtype=None,
                           tile_b_max=1024):
    """Convenience wrapper: prepares params then applies the kernel.

    For repeated calls, call prepare_params() once and use
    multilabel_net_apply() directly (avoids per-call cast/reshape ops).
    """
    params = prepare_params(w1, b1, w2, b2, compute_dtype=compute_dtype)
    return multilabel_net_apply(x, *params, out_dtype=out_dtype,
                                tile_b_max=tile_b_max)


def init_params(key, input_dim, output_dim, hidden=256):
    """Deterministic synthetic init mimicking nn.Linear's uniform(+-1/sqrt(fan_in))."""
    k1, k2, k3, k4 = jax.random.split(key, 4)
    bound1 = 1.0 / jnp.sqrt(input_dim)
    bound2 = 1.0 / jnp.sqrt(hidden)
    w1 = jax.random.uniform(k1, (input_dim, hidden), jnp.float32, -bound1, bound1)
    b1 = jax.random.uniform(k2, (hidden,), jnp.float32, -bound1, bound1)
    w2 = jax.random.uniform(k3, (hidden, output_dim), jnp.float32, -bound2, bound2)
    b2 = jax.random.uniform(k4, (output_dim,), jnp.float32, -bound2, bound2)
    return w1, b1, w2, b2


if __name__ == "__main__":
    key = jax.random.PRNGKey(0)
    k_x, k_p = jax.random.split(key)

    batch, input_dim, output_dim = 8, 32, 16
    x = jax.random.normal(k_x, (batch, input_dim), jnp.float32)
    w1, b1, w2, b2 = init_params(k_p, input_dim, output_dim)

    # Pure-JAX f32 reference (same semantics as the PyTorch module).
    ref = jnp.maximum(x @ w1 + b1, 0.0) @ w2 + b2

    # f32 compute path (precision=HIGHEST in-kernel): must match the reference.
    out_f32 = jax.block_until_ready(
        multilabel_net_forward(x, w1, b1, w2, b2, compute_dtype=jnp.float32))
    assert out_f32.shape == (batch, output_dim)
    assert out_f32.dtype == jnp.float32
    assert jnp.allclose(out_f32, ref, atol=1e-5, rtol=1e-5)

    # bf16 perf path: prepared params + bf16 output, f32 accumulation.
    p = prepare_params(w1, b1, w2, b2, compute_dtype=jnp.bfloat16)
    out_bf16 = jax.block_until_ready(multilabel_net_apply(x, *p))
    assert out_bf16.shape == (batch, output_dim)
    assert out_bf16.dtype == jnp.bfloat16
    assert jnp.allclose(out_bf16.astype(jnp.float32), ref, atol=5e-2, rtol=5e-2)

    print("KERNEL_OK")
</pallas_src>

<mosaic_0001>
module attributes {stable_mosaic.version = 11 : i64} {
  func.func @_mlp_kernel(%arg0: i32, %arg1: memref<8x32xf32, #tpu.memory_space<vmem>>, %arg2: memref<32x256xf32, #tpu.memory_space<vmem>>, %arg3: memref<1x256xf32, #tpu.memory_space<vmem>>, %arg4: memref<256x16xf32, #tpu.memory_space<vmem>>, %arg5: memref<1x16xf32, #tpu.memory_space<vmem>>, %arg6: memref<8x16xf32, #tpu.memory_space<vmem>>) attributes {dimension_semantics = [#tpu.dimension_semantics<parallel>], iteration_bounds = array<i64: 1>, scalar_prefetch = 0 : i64, scratch_operands = 0 : i64, tpu.core_type = #tpu.core_type<tc>, window_params = [{transform_indices = @transform_0, window_bounds = array<i64: 8, 32>}, {pipeline_mode = #tpu.pipeline_mode<synchronous>, transform_indices = @transform_1, window_bounds = array<i64: 32, 256>}, {pipeline_mode = #tpu.pipeline_mode<synchronous>, transform_indices = @transform_2, window_bounds = array<i64: 1, 256>}, {pipeline_mode = #tpu.pipeline_mode<synchronous>, transform_indices = @transform_3, window_bounds = array<i64: 256, 16>}, {pipeline_mode = #tpu.pipeline_mode<synchronous>, transform_indices = @transform_4, window_bounds = array<i64: 1, 16>}, {transform_indices = @transform_5, window_bounds = array<i64: 8, 16>}]} {
    %c0 = arith.constant 0 : index
    %c0_0 = arith.constant 0 : index
    %0 = vector.load %arg1[%c0, %c0_0] : memref<8x32xf32, #tpu.memory_space<vmem>>, vector<8x32xf32>
    %c0_1 = arith.constant 0 : index
    %c0_2 = arith.constant 0 : index
    %1 = vector.load %arg2[%c0_1, %c0_2] : memref<32x256xf32, #tpu.memory_space<vmem>>, vector<32x256xf32>
    %cst = arith.constant dense<0.000000e+00> : vector<8x256xf32>
    %2 = tpu.matmul %0, %1, %cst {dimension_numbers = #tpu.dot_dimension_numbers<[1], [0], [0], [1], [0, 0, 1, 1], [], []>, precision = #tpu.contract_precision<fp32>} : vector<8x32xf32>, vector<32x256xf32>, vector<8x256xf32> -> vector<8x256xf32>
    %c0_3 = arith.constant 0 : index
    %c0_4 = arith.constant 0 : index
    %3 = vector.load %arg3[%c0_3, %c0_4] : memref<1x256xf32, #tpu.memory_space<vmem>>, vector<1x256xf32>
    %4 = vector.broadcast %3 : vector<1x256xf32> to vector<8x256xf32>
    %5 = arith.addf %2, %4 : vector<8x256xf32>
    %cst_5 = arith.constant 0.000000e+00 : f32
    %6 = vector.broadcast %cst_5 : f32 to vector<8x256xf32>
    %7 = arith.maximumf %5, %6 : vector<8x256xf32>
    %c0_6 = arith.constant 0 : index
    %c0_7 = arith.constant 0 : index
    %8 = vector.load %arg4[%c0_6, %c0_7] : memref<256x16xf32, #tpu.memory_space<vmem>>, vector<256x16xf32>
    %cst_8 = arith.constant dense<0.000000e+00> : vector<8x16xf32>
    %9 = tpu.matmul %7, %8, %cst_8 {dimension_numbers = #tpu.dot_dimension_numbers<[1], [0], [0], [1], [0, 0, 1, 1], [], []>, precision = #tpu.contract_precision<fp32>} : vector<8x256xf32>, vector<256x16xf32>, vector<8x16xf32> -> vector<8x16xf32>
    %c0_9 = arith.constant 0 : index
    %c0_10 = arith.constant 0 : index
    %10 = vector.load %arg5[%c0_9, %c0_10] : memref<1x16xf32, #tpu.memory_space<vmem>>, vector<1x16xf32>
    %11 = vector.broadcast %10 : vector<1x16xf32> to vector<8x16xf32>
    %12 = arith.addf %9, %11 : vector<8x16xf32>
    %c0_11 = arith.constant 0 : index
    %c0_12 = arith.constant 0 : index
    %13 = vector.load %arg6[%c0_11, %c0_12] : memref<8x16xf32, #tpu.memory_space<vmem>>, vector<8x16xf32>
    tpu.vector_store %arg6[%c0_11, %c0_12], %12 {strides = array<i32>} : memref<8x16xf32, #tpu.memory_space<vmem>>, vector<8x16xf32>,
    return
  }
  func.func @transform_0(%arg0: i32) -> (i32, i32) {
    %c0_i32 = arith.constant 0 : i32
    %c0_i32_0 = arith.constant 0 : i32
    return %arg0, %c0_i32 : i32, i32
  }
  func.func @transform_1(%arg0: i32) -> (i32, i32) {
    %c0_i32 = arith.constant 0 : i32
    %c0_i32_0 = arith.constant 0 : i32
    %c0_i32_1 = arith.constant 0 : i32
    return %c0_i32, %c0_i32_0 : i32, i32
  }
  func.func @transform_2(%arg0: i32) -> (i32, i32) {
    %c0_i32 = arith.constant 0 : i32
    %c0_i32_0 = arith.constant 0 : i32
    %c0_i32_1 = arith.constant 0 : i32
    return %c0_i32, %c0_i32_0 : i32, i32
  }
  func.func @transform_3(%arg0: i32) -> (i32, i32) {
    %c0_i32 = arith.constant 0 : i32
    %c0_i32_0 = arith.constant 0 : i32
    %c0_i32_1 = arith.constant 0 : i32
    return %c0_i32, %c0_i32_0 : i32, i32
  }
  func.func @transform_4(%arg0: i32) -> (i32, i32) {
    %c0_i32 = arith.constant 0 : i32
    %c0_i32_0 = arith.constant 0 : i32
    %c0_i32_1 = arith.constant 0 : i32
    return %c0_i32, %c0_i32_0 : i32, i32
  }
  func.func @transform_5(%arg0: i32) -> (i32, i32) {
    %c0_i32 = arith.constant 0 : i32
    %c0_i32_0 = arith.constant 0 : i32
    return %arg0, %c0_i32 : i32, i32
  }
}

</mosaic_0001>

<bundles_post_ra>
// kernel: tpu_custom_call.1
= control target key start
LH: loop header
LB: loop body
LE: loop exit
PB: predicated region body
PF: predicated region fallthrough
CT: control target
= control target key end

     0   :  { %vm42_vm0 = vcmask 261120   ;;  %v1743_v9 = vmov 0.0   ;;  %s2541_s0 = inlined_call_operand.vmem [shape: f32[8,32], index: 0, kind: input, shape index: {}]   ;;  %s2542_s1 = inlined_call_operand.vmem [shape: f32[32,256], index: 1, kind: input, shape index: {}]   ;;  %s2543_s2 = inlined_call_operand.vmem [shape: f32[1,256], index: 2, kind: input, shape index: {}]   ;;  %s2544_s3 = inlined_call_operand.vmem [shape: f32[256,16], index: 3, kind: input, shape index: {}]   ;;  %s2545_s4 = inlined_call_operand.vmem [shape: f32[1,16], index: 4, kind: input, shape index: {}]   ;;  %s2546_s5 = inlined_call_operand.hbm [shape: f32[8,16], index: 5, kind: output, shape index: {}]  }
   0x1   :  { %v29_v0 = vld [vmem:[%s2542_s1 + $0x38] sm:$0xff]  ;;  %v28_v1 = vld [vmem:[%s2542_s1 + $0x30] sm:$0xff]  ;;  %v27_v2 = vld [vmem:[%s2542_s1 + $0x28] sm:$0xff]  ;;  %118 = vmatprep.mubr.f32.mxu0 %v1743_v9  ;;  %234 = vmatprep.mubr.f32.mxu1 %v1743_v9 }
   0x2   :  { %v1784_v3 = vand.u32 4294901760, %v29_v0  ;;  %v1786_v4 = vand.u32 4294901760, %v28_v1  ;;  %v1788_v5 = vand.u32 4294901760, %v27_v2  ;;  %v26_v6 = vld [vmem:[%s2542_s1 + $0x20] sm:$0xff]  ;;  %v25_v7 = vld [vmem:[%s2542_s1 + $0x18] sm:$0xff]  ;;  %v24_v8 = vld [vmem:[%s2542_s1 + $0x10] sm:$0xff] }
   0x3   :  { %v1801_v10 = vand.u32 4294901760, %v26_v6  ;;  %v1803_v11 = vand.u32 4294901760, %v25_v7  ;;  %v1805_v12 = vand.u32 4294901760, %v24_v8  ;;  %v23_v13 = vld [vmem:[%s2542_s1 + $0x8] sm:$0xff]  ;;  %v22_v14 = vld [vmem:[%s2542_s1] sm:$0xff] }
   0x4   :  { %v21_v15 = vld [vmem:[%s2541_s0] sm:$0xff]  ;;  %71 = vmatprep.subr.mxu0 %v1784_v3  ;;  %v1817_v16 = vand.u32 4294901760, %v23_v13  ;;  %v1820_v17 = vsub.f32 %v29_v0, %v1784_v3  ;;  %v1822_v18 = vand.u32 4294901760, %v22_v14  ;;  %v1825_v19 = vsub.f32 %v28_v1, %v1786_v4 }
   0x5   :  { %73 = vmatpush1.msra.mxu0 %v1786_v4  ;;  %v1829_v20 = vsub.f32 %v27_v2, %v1788_v5  ;;  %v44_v21 = vsel %vm42_vm0, %v21_v15, 0  ;;  %v1833_v22 = vsub.f32 %v26_v6, %v1801_v10  ;;  %v1836_v23 = vsub.f32 %v25_v7, %v1803_v11 }
   0x6   :  { %10 = vsyncpa [#allocation3], 0  ;;  %75 = vmatprep.subr.mxu0 %v1788_v5  ;;  %v156_v24 = vand.u32 4294901760, %v1820_v17  ;;  %v162_v25 = vand.u32 4294901760, %v1825_v19  ;;  %v1841_v26 = vand.u32 4294901760, %v44_v21  ;;  %v1844_v27 = vsub.f32 %v24_v8, %v1805_v12  ;;  %v622_v55 = vld [vmem:[%s2544_s3 + $0xf8] sm:$0xff] }
   0x7   :  { %77 = vmatpush1.msra.mxu0 %v1801_v10  ;;  %v168_v28 = vand.u32 4294901760, %v1829_v20  ;;  %v174_v29 = vand.u32 4294901760, %v1833_v22  ;;  %v180_v30 = vand.u32 4294901760, %v1836_v23  ;;  %v1851_v31 = vsub.f32 %v23_v13, %v1817_v16  ;;  %v606_v57 = vld [vmem:[%s2544_s3 + $0x78] sm:$0xff]  ;;  %v621_v58 = vld [vmem:[%s2544_s3 + $0xf0] sm:$0xff]  ;;  %s1744_s21 = smov [#allocation2]  }
   0x8   :  { %79 = vmatprep.subr.mxu0 %v1803_v11  ;;  %v157_v32 = vsub.f32 %v1820_v17, %v156_v24  ;;  %v163_v33 = vsub.f32 %v1825_v19, %v162_v25  ;;  %v1861_v34 = vsub.f32 %v44_v21, %v1841_v26  ;;  %v186_v35 = vand.u32 4294901760, %v1844_v27  ;;  %v605_v60 = vld [vmem:[%s2544_s3 + $0x70] sm:$0xff]  ;;  %s1500_s22 = sshll.u32 %s1744_s21, 4  ;;  %s1501_s22 = int_to_ptr.vmem [resolvable:$true] %s1500_s22 }
   0x9   :  { %81 = vmatpush1.msra.mxu0 %v1805_v12  ;;  %v169_v36 = vsub.f32 %v1829_v20, %v168_v28  ;;  %v175_v37 = vsub.f32 %v1833_v22, %v174_v29  ;;  %v181_v38 = vsub.f32 %v1836_v23, %v180_v30  ;;  %v192_v39 = vand.u32 4294901760, %v1851_v31  ;;  %p1726_p1 = scmp.lt.s32.totalorder %s1501_s22, %s1501_s22 }
   0xa   :  { %83 = vmatprep.subr.mxu0 %v1817_v16  ;;  %v158_v40 = vand.u32 4294901760, %v157_v32  ;;  %v164_v41 = vand.u32 4294901760, %v163_v33  ;;  %v121_v42 = vand.u32 4294901760, %v1861_v34  ;;  %v187_v43 = vsub.f32 %v1844_v27, %v186_v35 }
   0xb   :  { %85 = vmatpush1.msra.mxu0 %v1822_v18  ;;  %v170_v44 = vand.u32 4294901760, %v169_v36  ;;  %v176_v45 = vand.u32 4294901760, %v175_v37  ;;  %v193_v46 = vsub.f32 %v1851_v31, %v192_v39  ;;  %v182_v48 = vand.u32 4294901760, %v181_v38 }
   0xc   :  { %159 = vmatprep.subr.mxu1 %v158_v40  ;;  %268 = vmatprep.subr.mxu0 %v1820_v17  ;;  %v122_v47 = vsub.f32 %v1861_v34, %v121_v42  ;;  %v197_v49 = vsub.f32 %v22_v14, %v1822_v18  ;;  %v188_v50 = vand.u32 4294901760, %v187_v43  ;;  %v1903_v59 = vand.u32 4294901760, %v622_v55  ;;  %v616_v43 = vld [vmem:[%s2544_s3 + $0xc8] sm:$0xff] }
   0xd   :  { %165 = vmatpush1.msra.mxu1 %v164_v41  ;;  %v194_v52 = vand.u32 4294901760, %v193_v46  ;;  %v1910_v61 = vand.u32 4294901760, %v606_v57  ;;  %v1914_v62 = vand.u32 4294901760, %v621_v58  ;;  %v1917_v63 = vand.u32 4294901760, %v605_v60 }
   0xe   :  { %171 = vmatprep.subr.mxu1 %v170_v44  ;;  %v123_v51 = vand.u32 4294901760, %v122_v47  ;;  %v198_v53 = vand.u32 4294901760, %v197_v49  ;;  %2623 = vst [vmem:[#allocation5_spill] sm:$0xff] %v1903_v59  ;;  %v1922_v0 = vsub.f32 %v622_v55, %v1903_v59  ;;  %v600_v47 = vld [vmem:[%s2544_s3 + $0x48] sm:$0xff]  ;;  %vm1492_vm1 = vcmask 130048  }
   0xf   :  { %177 = vmatpush1.msra.mxu1 %v176_v45  ;;  %v1928_v1 = vsub.f32 %v606_v57, %v1910_v61  ;;  %v1934_v2 = vsub.f32 %v621_v58, %v1914_v62  ;;  %v1940_v6 = vsub.f32 %v605_v60, %v1917_v63  ;;  %v599_v57 = vld [vmem:[%s2544_s3 + $0x40] sm:$0xff] }
  0x10   :  { %124 = vmatmul.mubr.f32.vlgmr.msra.gmra.mxu0 %v123_v51  ;;  %183 = vmatprep.subr.mxu1 %v182_v48  ;;  %v199_v54 = vsub.f32 %v197_v49, %v198_v53  ;;  %2624 = vst [vmem:[#allocation6_spill] sm:$0xff] %v1922_v0  ;;  %v2566_v7 = vand.u32 4294901760, %v1922_v0 }
  0x11   :  { %271 = vmatpush1.msra.mxu0 %v1825_v19  ;;  %189 = vmatpush1.msra.mxu1 %v188_v50  ;;  %v2564_v8 = vand.u32 4294901760, %v1928_v1  ;;  %v2563_v13 = vand.u32 4294901760, %v1934_v2  ;;  %v2561_v14 = vand.u32 4294901760, %v1940_v6 }
  0x12   :  { %274 = vmatprep.subr.mxu0 %v1829_v20  ;;  %195 = vmatprep.subr.mxu1 %v194_v52  ;;  %v200_v56 = vand.u32 4294901760, %v199_v54  ;;  %v858_v15 = vsub.f32 %v1922_v0, %v2566_v7  ;;  %v615_v52 = vld [vmem:[%s2544_s3 + $0xc0] sm:$0xff] }
  0x13   :  { %277 = vmatpush1.msra.mxu0 %v1833_v22  ;;  %322 = vmatprep.mubr.f32.mxu0 %v1743_v9  ;;  %v746_v17 = vsub.f32 %v1928_v1, %v2564_v8 }
  0x14   :  { %280 = vmatprep.subr.mxu0 %v1836_v23  ;;  %201 = vmatpush1.msra.mxu1 %v200_v56  ;;  %v859_v19 = vand.u32 4294901760, %v858_v15  ;;  %v603_v23 = vld [vmem:[%s2544_s3 + $0x60] sm:$0xff]  ;;  %v2085_v56 = vand.u32 4294901760, %v616_v43 }
  0x15   :  { %283 = vmatpush1.msra.mxu0 %v1844_v27  ;;  %236 = vmatmul.mubr.f32.vlgmr.msra.gmra.mxu1 %v1841_v26 }
  0x16   :  { %286 = vmatprep.subr.mxu0 %v1851_v31  ;;  %356 = vmatprep.subr.mxu1 %v1784_v3 }
  0x17   :  { %289 = vmatpush1.msra.mxu0 %v197_v49  ;;  %358 = vmatpush1.msra.mxu1 %v1786_v4 }
  0x18   :  { %325 = vmatmul.mubr.f32.vlgmr.msra.gmra.mxu0 %v1861_v34  ;;  %360 = vmatprep.subr.mxu1 %v1788_v5  ;;  %v617_v34 = vld [vmem:[%s2544_s3 + $0xd0] sm:$0xff] }
  0x19   :  { %440 = vmatprep.subr.mxu0 %v156_v24  ;;  %362 = vmatpush1.msra.mxu1 %v1801_v10  ;;  %v2053_v41 = vand.u32 4294901760, %v617_v34 }
  0x1a   :  { %444 = vmatpush1.msra.mxu0 %v162_v25  ;;  %364 = vmatprep.subr.mxu1 %v1803_v11  ;;  %v2012_v25 = vand.u32 4294901760, %v603_v23 }
  0x1b   :  { %448 = vmatprep.subr.mxu0 %v168_v28  ;;  %366 = vmatpush1.msra.mxu1 %v1805_v12  ;;  %v2074_v51 = vsub.f32 %v617_v34, %v2053_v41 }
  0x1c   :  { %452 = vmatpush1.msra.mxu0 %v174_v29  ;;  %368 = vmatprep.subr.mxu1 %v1817_v16  ;;  %v2030_v32 = vsub.f32 %v603_v23, %v2012_v25  ;;  %v2117_v23 = vand.u32 4294901760, %v599_v57 }
  0x1d   :  { %456 = vmatprep.subr.mxu0 %v180_v30  ;;  %370 = vmatpush1.msra.mxu1 %v1822_v18  ;;  %v602_v30 = vld [vmem:[%s2544_s3 + $0x58] sm:$0xff]  ;;  %v2551_v15 = vand.u32 4294901760, %v2074_v51 }
  0x1e   :  { %403 = vmatprep.mubr.f32.mxu1 %v1743_v9  ;;  %460 = vmatpush1.msra.mxu0 %v186_v35  ;;  %v2032_v33 = vand.u32 4294901760, %v602_v30 }
  0x1f   :  { %407 = vmatmul.mubr.f32.vlgmr.msra.gmra.mxu1 %v121_v42  ;;  %464 = vmatprep.subr.mxu0 %v192_v39  ;;  %v2556_v39 = vand.u32 4294901760, %v2030_v32  ;;  %v601_v42 = vld [vmem:[%s2544_s3 + $0x50] sm:$0xff] }
  0x20   :  { %534 = vmatprep.subr.mxu1 %v1784_v3  ;;  %468 = vmatpush1.msra.mxu0 %v198_v53  ;;  %v865_v3 = vsub.f32 %v1934_v2, %v2563_v13  ;;  %v2051_v40 = vsub.f32 %v602_v30, %v2032_v33  ;;  %v2083_v55 = vand.u32 4294901760, %v601_v42 }
  0x21   :  { %501 = vmatprep.mubr.f32.mxu0 %v1743_v9  ;;  %536 = vmatpush1.msra.mxu1 %v1786_v4  ;;  %v753_v4 = vsub.f32 %v1940_v6, %v2561_v14  ;;  %v767_v49 = vsub.f32 %v2030_v32, %v2556_v39 }
  0x22   :  { %503 = vmatmul.mubr.f32.vlgmr.msra.gmra.mxu0 %v1841_v26  ;;  %538 = vmatprep.subr.mxu1 %v1788_v5  ;;  %v747_v5 = vand.u32 4294901760, %v746_v17  ;;  %v866_v20 = vand.u32 4294901760, %v865_v3  ;;  %v2553_v50 = vand.u32 4294901760, %v2051_v40  ;;  %v2094_v17 = vand.u32 4294901760, %v600_v47  ;;  %v614_v3 = vld [vmem:[%s2544_s3 + $0xb8] sm:$0xff] }
  0x23   :  { %540 = vmatpush1.msra.mxu1 %v1801_v10  ;;  %581 = vmatprep.mubr.f32.mxu1 %v1743_v9  ;;  %v754_v9 = vand.u32 4294901760, %v753_v4  ;;  %v620_v10 = vld [vmem:[%s2544_s3 + $0xe8] sm:$0xff]  ;;  %v768_v58 = vand.u32 4294901760, %v767_v49 }
  0x24   :  { %542 = vmatprep.subr.mxu1 %v1803_v11  ;;  %1509 = vmatprep.subr.mxu0 %v1903_v59  ;;  %v1990_v11 = vand.u32 4294901760, %v620_v10  ;;  %v774_v60 = vsub.f32 %v2051_v40, %v2553_v50 }
  0x25   :  { %544 = vmatpush1.msra.mxu1 %v1805_v12  ;;  %1510 = vmatpush3.msra.mxu0 %v1910_v61  ;;  %v604_v12 = vld [vmem:[%s2544_s3 + $0x68] sm:$0xff] }
  0x26   :  { %546 = vmatprep.subr.mxu1 %v1817_v16  ;;  %1511 = vmatprep.subr.mxu0 %v1914_v62  ;;  %v1995_v16 = vand.u32 4294901760, %v604_v12  ;;  %v2001_v21 = vsub.f32 %v620_v10, %v1990_v11  ;;  %v775_v10 = vand.u32 4294901760, %v774_v60  ;;  %v597_v60 = vld [vmem:[%s2544_s3 + $0x30] sm:$0xff] }
  0x27   :  { %548 = vmatpush1.msra.mxu1 %v1822_v18  ;;  %1512 = vmatpush3.msra.mxu0 %v1917_v63  ;;  %v619_v18 = vld [vmem:[%s2544_s3 + $0xe0] sm:$0xff] }
  0x28   :  { %583 = vmatmul.mubr.f32.vlgmr.msra.gmra.mxu1 %v1841_v26  ;;  %1544 = vmatprep.subr.mxu1 %v859_v19  ;;  %v2003_v22 = vand.u32 4294901760, %v619_v18  ;;  %v2010_v24 = vsub.f32 %v604_v12, %v1995_v16  ;;  %v618_v26 = vld [vmem:[%s2544_s3 + $0xd8] sm:$0xff]  ;;  %v2560_v27 = vand.u32 4294901760, %v2001_v21  ;;  %v2100_v19 = vsub.f32 %v601_v42, %v2083_v55 }
  0x29   :  { %1545 = vmatpush3.msra.mxu1 %v747_v5  ;;  %1513 = vmatprep.subr.mxu0 %v1990_v11  ;;  %v2022_v29 = vand.u32 4294901760, %v618_v26  ;;  %v2103_v5 = vsub.f32 %v616_v43, %v2085_v56  ;;  %v893_v12 = vsub.f32 %v2074_v51, %v2551_v15  ;;  %v2187_v15 = vand.u32 4294901760, %v597_v60 }
  0x2a   :  { %1546 = vmatprep.subr.mxu1 %v866_v20  ;;  %1514 = vmatpush3.msra.mxu0 %v1995_v16  ;;  %v2020_v28 = vsub.f32 %v619_v18, %v2003_v22  ;;  %v2559_v31 = vand.u32 4294901760, %v2010_v24  ;;  %v872_v35 = vsub.f32 %v2001_v21, %v2560_v27  ;;  %v2105_v20 = vand.u32 4294901760, %v615_v52 }
  0x2b   :  { %1547 = vmatpush3.msra.mxu1 %v754_v9  ;;  %1515 = vmatprep.subr.mxu0 %v2003_v22  ;;  %v2043_v37 = vsub.f32 %v618_v26, %v2022_v29  ;;  %v598_v9 = vld [vmem:[%s2544_s3 + $0x38] sm:$0xff]  ;;  %v2115_v18 = vsub.f32 %v600_v47, %v2094_v17  ;;  %v2550_v26 = vand.u32 4294901760, %v2100_v19  ;;  %v2548_v30 = vand.u32 4294901760, %v2103_v5 }
  0x2c   :  { %1516 = vmatpush3.msra.mxu0 %v2012_v25  ;;  %v2557_v36 = vand.u32 4294901760, %v2020_v28  ;;  %v760_v38 = vsub.f32 %v2010_v24, %v2559_v31  ;;  %v873_v44 = vand.u32 4294901760, %v872_v35  ;;  %v2123_v34 = vsub.f32 %v615_v52, %v2105_v20 }
  0x2d   :  { %1517 = vmatprep.subr.mxu0 %v2022_v29  ;;  %v2554_v46 = vand.u32 4294901760, %v2043_v37  ;;  %v2125_v35 = vand.u32 4294901760, %v614_v3  ;;  %v894_v42 = vand.u32 4294901760, %v893_v12  ;;  %v2547_v43 = vand.u32 4294901760, %v2115_v18 }
  0x2e   :  { %1518 = vmatpush3.msra.mxu0 %v2032_v33  ;;  %v879_v45 = vsub.f32 %v2020_v28, %v2557_v36  ;;  %v761_v48 = vand.u32 4294901760, %v760_v38  ;;  %1548 = vmatprep.subr.mxu1 %v873_v44  ;;  %v613_v38 = vld [vmem:[%s2544_s3 + $0xb0] sm:$0xff]  ;;  %v2133_v44 = vsub.f32 %v599_v57, %v2117_v23  ;;  %v781_v47 = vsub.f32 %v2100_v19, %v2550_v26 }
  0x2f   :  { %1519 = vmatprep.subr.mxu0 %v2053_v41  ;;  %v886_v54 = vsub.f32 %v2043_v37, %v2554_v46  ;;  %v2549_v49 = vand.u32 4294901760, %v2123_v34  ;;  %v2146_v52 = vsub.f32 %v614_v3, %v2125_v35  ;;  %v612_v3 = vld [vmem:[%s2544_s3 + $0xa8] sm:$0xff]  ;;  %v2204_v36 = vsub.f32 %v597_v60, %v2187_v15 }
  0x30   :  { %v880_v53 = vand.u32 4294901760, %v879_v45  ;;  %1549 = vmatpush3.msra.mxu1 %v761_v48  ;;  %1520 = vmatpush3.msra.mxu0 %v2083_v55  ;;  %v2135_v45 = vand.u32 4294901760, %v598_v9  ;;  %v900_v48 = vsub.f32 %v2103_v5, %v2548_v30 }
  0x31   :  { %v887_v4 = vand.u32 4294901760, %v886_v54  ;;  %1521 = vmatprep.subr.mxu0 %v2085_v56  ;;  %v2552_v54 = vand.u32 4294901760, %v2133_v44  ;;  %v907_v12 = vsub.f32 %v2123_v34, %v2549_v49  ;;  %v611_v49 = vld [vmem:[%s2544_s3 + $0xa0] sm:$0xff]  ;;  %2627 = vst [vmem:[#allocation9_spill] sm:$0xff] %v2204_v36 }
  0x32   :  { %1550 = vmatprep.subr.mxu1 %v880_v53  ;;  %1522 = vmatpush3.msra.mxu0 %v2094_v17  ;;  %v788_v53 = vsub.f32 %v2115_v18, %v2547_v43  ;;  %v2154_v57 = vsub.f32 %v598_v9, %v2135_v45  ;;  %v2555_v9 = vand.u32 4294901760, %v2146_v52 }
  0x33   :  { %1551 = vmatpush3.msra.mxu1 %v768_v58  ;;  %1523 = vmatprep.subr.mxu0 %v2105_v20  ;;  %v2156_v58 = vand.u32 4294901760, %v613_v38  ;;  %v795_v30 = vsub.f32 %v2133_v44, %v2552_v54  ;;  %v908_v26 = vand.u32 4294901760, %v907_v12  ;;  %v2189_v54 = vand.u32 4294901760, %v612_v3 }
  0x34   :  { %1552 = vmatprep.subr.mxu1 %v887_v4  ;;  %1524 = vmatpush3.msra.mxu0 %v2117_v23  ;;  %2625 = vst [vmem:[#allocation7_spill] sm:$0xff] %v2154_v57  ;;  %v782_v4 = vand.u32 4294901760, %v781_v47  ;;  %v789_v43 = vand.u32 4294901760, %v788_v53  ;;  %v2558_v47 = vand.u32 4294901760, %v2154_v57  ;;  %v914_v53 = vsub.f32 %v2146_v52, %v2555_v9  ;;  %v610_v9 = vld [vmem:[%s2544_s3 + $0x98] sm:$0xff] }
  0x35   :  { %1553 = vmatpush3.msra.mxu1 %v775_v10  ;;  %1525 = vmatprep.subr.mxu0 %v2125_v35  ;;  %v901_v10 = vand.u32 4294901760, %v900_v48  ;;  %v2178_v48 = vsub.f32 %v613_v38, %v2156_v58  ;;  %v595_v38 = vld [vmem:[%s2544_s3 + $0x20] sm:$0xff]  ;;  %v796_v50 = vand.u32 4294901760, %v795_v30  ;;  %v2209_v30 = vand.u32 4294901760, %v611_v49 }
  0x36   :  { %1554 = vmatprep.subr.mxu1 %v894_v42  ;;  %v596_v42 = vld [vmem:[%s2544_s3 + $0x28] sm:$0xff]  ;;  %1526 = vmatpush3.msra.mxu0 %v2135_v45  ;;  %v802_v46 = vsub.f32 %v2154_v57, %v2558_v47  ;;  %v915_v39 = vand.u32 4294901760, %v914_v53  ;;  %v594_v47 = vld [vmem:[%s2544_s3 + $0x18] sm:$0xff]  ;;  %v2221_v53 = vand.u32 4294901760, %v595_v38 }
  0x37   :  { %2626 = vst [vmem:[#allocation8_spill] sm:$0xff] %v2178_v48  ;;  %1527 = vmatprep.subr.mxu0 %v2156_v58  ;;  %1555 = vmatpush3.msra.mxu1 %v782_v4  ;;  %v2562_v4 = vand.u32 4294901760, %v2178_v48  ;;  %v2198_v12 = vand.u32 4294901760, %v596_v42  ;;  %v2227_v14 = vsub.f32 %v611_v49, %v2209_v30  ;;  %v2239_v13 = vand.u32 4294901760, %v594_v47 }
  0x38   :  { %1556 = vmatprep.subr.mxu1 %v901_v10  ;;  %v2207_v10 = vsub.f32 %v612_v3, %v2189_v54  ;;  %1528 = vmatpush3.msra.mxu0 %v2187_v15  ;;  %v803_v31 = vand.u32 4294901760, %v802_v46  ;;  %v2565_v3 = vand.u32 4294901760, %v2204_v36  ;;  %v2229_v46 = vand.u32 4294901760, %v610_v9 }
  0x39   :  { %1557 = vmatpush3.msra.mxu1 %v789_v43  ;;  %v921_v43 = vsub.f32 %v2178_v48, %v2562_v4  ;;  %v2219_v60 = vsub.f32 %v596_v42, %v2198_v12  ;;  %1529 = vmatprep.subr.mxu0 %v2189_v54  ;;  %2630 = vst [vmem:[#allocation12_spill] sm:$0xff] %v2227_v14  ;;  %2633 = vst [vmem:[#allocation15_spill] sm:$0xff] %v2239_v13 }
  0x3a   :  { %2628 = vst [vmem:[#allocation10_spill] sm:$0xff] %v2207_v10  ;;  %1558 = vmatprep.subr.mxu1 %v908_v26  ;;  %v2567_v27 = vand.u32 4294901760, %v2207_v10  ;;  %2631 = vst [vmem:[#allocation13_spill] sm:$0xff] %v2229_v46  ;;  %v609_v26 = vld [vmem:[%s2544_s3 + $0x90] sm:$0xff]  ;;  %1530 = vmatpush3.msra.mxu0 %v2198_v12  ;;  %v809_v49 = vsub.f32 %v2204_v36, %v2565_v3  ;;  %v2258_v3 = vsub.f32 %v594_v47, %v2239_v13 }
  0x3b   :  { %2629 = vst [vmem:[#allocation11_spill] sm:$0xff] %v2219_v60  ;;  %1559 = vmatpush3.msra.mxu1 %v796_v50  ;;  %v922_v42 = vand.u32 4294901760, %v921_v43  ;;  %v2568_v4 = vand.u32 4294901760, %v2219_v60  ;;  %v2237_v50 = vsub.f32 %v595_v38, %v2221_v53  ;;  %1531 = vmatprep.subr.mxu0 %v2209_v30  ;;  %v2250_v43 = vsub.f32 %v610_v9, %v2229_v46  ;;  %v608_v9 = vld [vmem:[%s2544_s3 + $0x88] sm:$0xff] }
  0x3c   :  { %1560 = vmatprep.subr.mxu1 %v915_v39  ;;  %v928_v8 = vsub.f32 %v2207_v10, %v2567_v27  ;;  %1532 = vmatpush3.msra.mxu0 %v2221_v53  ;;  %2635 = vst [vmem:[#allocation17_spill] sm:$0xff] %v2258_v3  ;;  %v2260_v7 = vand.u32 4294901760, %v609_v26  ;;  %v593_v27 = vld [vmem:[%s2544_s3 + $0x10] sm:$0xff] }
  0x3d   :  { %2632 = vst [vmem:[#allocation14_spill] sm:$0xff] %v2237_v50  ;;  %1561 = vmatpush3.msra.mxu1 %v803_v31  ;;  %2634 = vst [vmem:[#allocation16_spill] sm:$0xff] %v2250_v43  ;;  %v816_v31 = vsub.f32 %v2219_v60, %v2568_v4  ;;  %1533 = vmatprep.subr.mxu0 %v2229_v46  ;;  %v2637_v4 = vand.u32 4294901760, %v2227_v14  ;;  %v592_v60 = vld [vmem:[%s2544_s3 + $0x8] sm:$0xff]  ;;  %v2638_v36 = vand.u32 4294901760, %v2237_v50 }
  0x3e   :  { %1562 = vmatprep.subr.mxu1 %v922_v42  ;;  %2636 = vst [vmem:[#allocation18_spill] sm:$0xff] %v2260_v7  ;;  %v810_v42 = vand.u32 4294901760, %v809_v49  ;;  %v929_v39 = vand.u32 4294901760, %v928_v8  ;;  %1534 = vmatpush3.msra.mxu0 %v2239_v13  ;;  %v2282_v8 = vsub.f32 %v609_v26, %v2260_v7  ;;  %v2291_v13 = vand.u32 4294901760, %v593_v27  ;;  %v591_v26 = vld [vmem:[%s2544_s3] sm:$0xff] }
  0x3f   :  { %v935_v38 = vsub.f32 %v2227_v14, %v2637_v4  ;;  %v817_v10 = vand.u32 4294901760, %v816_v31  ;;  %v823_v48 = vsub.f32 %v2237_v50, %v2638_v36  ;;  %v607_v4 = vld [vmem:[%s2544_s3 + $0x80] sm:$0xff]  ;;  %1535 = vmatprep.subr.mxu0 %v2260_v7  ;;  %v2640_v14 = vand.u32 4294901760, %v2250_v43 }
  0x40   :  { %2639 = vst [vmem:[#allocation19_spill] sm:$0xff] %v2282_v8  ;;  %1563 = vmatpush3.msra.mxu1 %v810_v42  ;;  %2641 = vst [vmem:[#allocation20_spill] sm:$0xff] %v2291_v13  ;;  %v2293_v36 = vand.u32 4294901760, %v608_v9  ;;  %v2643_v50 = vand.u32 4294901760, %v2258_v3  ;;  %v2302_v42 = vand.u32 4294901760, %v592_v60  ;;  %v2310_v46 = vand.u32 4294901760, %v607_v4  ;;  %1536 = vmatpush3.msra.mxu0 %v2291_v13 }
  0x41   :  { %v936_v47 = vand.u32 4294901760, %v935_v38  ;;  %v942_v31 = vsub.f32 %v2250_v43, %v2640_v14  ;;  %1564 = vmatprep.subr.mxu1 %v929_v39  ;;  %v824_v49 = vand.u32 4294901760, %v823_v48  ;;  %v2591_v38 = vand.u32 4294901760, %v2282_v8 }
  0x42   :  { %2642 = vst [vmem:[#allocation21_spill] sm:$0xff] %v2293_v36  ;;  %v830_v7 = vsub.f32 %v2258_v3, %v2643_v50  ;;  %2644 = vst [vmem:[#allocation22_spill] sm:$0xff] %v2302_v42  ;;  %1565 = vmatpush3.msra.mxu1 %v817_v10  ;;  %v2305_v43 = vsub.f32 %v593_v27, %v2291_v13  ;;  %v2308_v57 = vsub.f32 %v608_v9, %v2293_v36 }
  0x43   :  { %v943_v14 = vand.u32 4294901760, %v942_v31  ;;  %2647 = vst [vmem:[#allocation25_spill] sm:$0xff] %v2310_v46  ;;  %1566 = vmatprep.subr.mxu1 %v936_v47  ;;  %v949_v50 = vsub.f32 %v2282_v8, %v2591_v38  ;;  %v2317_v39 = vsub.f32 %v592_v60, %v2302_v42  ;;  %v2319_v10 = vand.u32 4294901760, %v591_v26  ;;  %1537 = vmatprep.subr.mxu0 %v2293_v36 }
  0x44   :  { %2645 = vst [vmem:[#allocation23_spill] sm:$0xff] %v2305_v43  ;;  %2646 = vst [vmem:[#allocation24_spill] sm:$0xff] %v2308_v57  ;;  %v831_v48 = vand.u32 4294901760, %v830_v7  ;;  %1567 = vmatpush3.msra.mxu1 %v824_v49  ;;  %v2592_v27 = vand.u32 4294901760, %v2305_v43  ;;  %v2593_v9 = vand.u32 4294901760, %v2308_v57  ;;  %v2325_v31 = vsub.f32 %v607_v4, %v2310_v46  ;;  %1538 = vmatpush3.msra.mxu0 %v2302_v42 }
  0x45   :  { %2648 = vst [vmem:[#allocation26_spill] sm:$0xff] %v2317_v39  ;;  %2649 = vst [vmem:[#allocation27_spill] sm:$0xff] %v2319_v10  ;;  %1568 = vmatprep.subr.mxu1 %v943_v14  ;;  %v950_v7 = vand.u32 4294901760, %v949_v50  ;;  %v2598_v47 = vand.u32 4294901760, %v2317_v39  ;;  %v2330_v60 = vsub.f32 %v591_v26, %v2319_v10  ;;  %1539 = vmatprep.subr.mxu0 %v2310_v46 }
  0x46   :  { %2650 = vst [vmem:[#allocation28_spill] sm:$0xff] %v2325_v31  ;;  %1569 = vmatpush3.msra.mxu1 %v831_v48  ;;  %v837_v49 = vsub.f32 %v2305_v43, %v2592_v27  ;;  %v956_v4 = vsub.f32 %v2308_v57, %v2593_v9  ;;  %v2599_v38 = vand.u32 4294901760, %v2325_v31  ;;  %1540 = vmatpush3.msra.mxu0 %v2319_v10 }
  0x47   :  { %2651 = vst [vmem:[#allocation29_spill] sm:$0xff] %v2330_v60  ;;  %1570 = vmatprep.subr.mxu1 %v950_v7  ;;  %v844_v26 = vsub.f32 %v2317_v39, %v2598_v47  ;;  %v2603_v14 = vand.u32 4294901760, %v2330_v60  ;;  %1579 = vmatprep.subr.mxu0 %v1922_v0 }
  0x48   :  { %v838_v48 = vand.u32 4294901760, %v837_v49  ;;  %v957_v50 = vand.u32 4294901760, %v956_v4  ;;  %v963_v27 = vsub.f32 %v2325_v31, %v2599_v38  ;;  %v32_v49 = vlaneseq }
  0x49   :  { %v845_v9 = vand.u32 4294901760, %v844_v26  ;;  %v851_v57 = vsub.f32 %v2330_v60, %v2603_v14  ;;  %v30_v26 = vld [vmem:[%s2543_s2] sm:$0x3] }
  0x4a   :  { %1571 = vmatpush3.msra.mxu1 %v838_v48  ;;  %v964_v7 = vand.u32 4294901760, %v963_v27  ;;  %v33_v4 = vshrl.u32 %v32_v49, 7 }
  0x4b   :  { %1572 = vmatprep.subr.mxu1 %v957_v50  ;;  %v852_v43 = vand.u32 4294901760, %v851_v57 }
  0x4c   :  { %1573 = vmatpush3.msra.mxu1 %v845_v9  ;;  %v34_v47 = vsub.s32 0, %v33_v4  ;;  %v38_v38 = vsub.s32 1, %v33_v4 }
  0x4d   :  { %1574 = vmatprep.subr.mxu1 %v964_v7 }
  0x4e   :  { %1575 = vmatpush3.msra.mxu1 %v852_v43  ;;  %v35_v31 = vrot.slane %v30_v26, %v34_v47  ;;  %v39_v14 = vrot.slane %v30_v26, %v38_v38 }
  0x4f   :  { %1614 = vmatprep.subr.mxu1 %v1903_v59 }
  0xd0   :  { %v125_v0 = vpop.f32.mrf.mxu0 }
  0xd1   :  { %v126_v50 = vadd.f32 %v125_v0, %v35_v31 }
  0xd2   :  { %v127_v48 = vpop.f32.mrf.mxu0 }
  0xd3   :  { %v128_v57 = vadd.f32 %v127_v48, %v39_v14 }
  0xd5   :  { %v237_v27 = vpop.f32.mrf.mxu1 }
  0xd6   :  { %v238_v43 = vadd.f32 %v237_v27, %v126_v50 }
  0xd7   :  { %v239_v9 = vpop.f32.mrf.mxu1 }
  0xd8   :  { %v326_v7 = vpop.f32.mrf.mxu0  ;;  %v240_v60 = vadd.f32 %v239_v9, %v128_v57  ;;  %v2655_v57 = vld [vmem:[#allocation8_spill] sm:$0xff]  ;;  %v2656_v9 = vld [vmem:[#allocation18_spill] sm:$0xff] }
  0xd9   :  { %v327_v49 = vadd.f32 %v326_v7, %v238_v43  ;;  %v2657_v7 = vld [vmem:[#allocation9_spill] sm:$0xff]  ;;  %v2658_v43 = vld [vmem:[#allocation20_spill] sm:$0xff] }
  0xda   :  { %v328_v8 = vpop.f32.mrf.mxu0 }
  0xdb   :  { %v329_v10 = vadd.f32 %v328_v8, %v240_v60  ;;  %v2654_v60 = vld [vmem:[#allocation15_spill] sm:$0xff] }
  0xdf   :  { %v408_v39 = vpop.f32.mrf.mxu1 }
  0xe0   :  { %v409_v46 = vadd.f32 %v408_v39, %v327_v49  ;;  %v2652_v39 = vld [vmem:[#allocation13_spill] sm:$0xff]  ;;  %v2659_v49 = vld [vmem:[#allocation10_spill] sm:$0xff] }
  0xe1   :  { %v410_v3 = vpop.f32.mrf.mxu1 }
  0xe2   :  { %v504_v59 = vpop.f32.mrf.mxu0  ;;  %v411_v42 = vadd.f32 %v410_v3, %v329_v10  ;;  %v2653_v10 = vld [vmem:[#allocation7_spill] sm:$0xff] }
  0xe3   :  { %v505_v36 = vadd.f32 %v504_v59, %v409_v46 }
  0xe4   :  { %v506_v4 = vpop.f32.mrf.mxu0 }
  0xe5   :  { %v507_v38 = vadd.f32 %v506_v4, %v411_v42  ;;  %v2660_v4 = vld [vmem:[#allocation21_spill] sm:$0xff] }
  0xe8   :  { %v584_v47 = vpop.f32.mrf.mxu1 }
  0xe9   :  { %v585_v26 = vadd.f32 %v584_v47, %v505_v36  ;;  %v2661_v47 = vld [vmem:[#allocation11_spill] sm:$0xff] }
  0xea   :  { %v586_v13 = vpop.f32.mrf.mxu1 }
  0xeb   :  { %v589_v0 = vmax.f32 %v585_v26, 0.0  ;;  %v587_v31 = vadd.f32 %v586_v13, %v507_v38  ;;  %v2662_v38 = vld [vmem:[#allocation22_spill] sm:$0xff]  ;;  %v2663_v26 = vld [vmem:[#allocation12_spill] sm:$0xff] }
  0xed   :  { %v2356_v14 = vand.u32 4294901760, %v589_v0  ;;  %v590_v48 = vmax.f32 %v587_v31, 0.0  ;;  %v2665_v31 = vld [vmem:[#allocation14_spill] sm:$0xff] }
  0xef   :  { %v2359_v27 = vsub.f32 %v589_v0, %v2356_v14  ;;  %v2361_v50 = vand.u32 4294901760, %v590_v48  ;;  %v2664_v0 = vld [vmem:[#allocation25_spill] sm:$0xff] }
  0xf1   :  { %v734_v8 = vand.u32 4294901760, %v2359_v27  ;;  %v727_v3 = vsub.f32 %v590_v48, %v2361_v50  ;;  %967 = vmatprep.mubr.f32.mxu1 %v2361_v50  ;;  %v2666_v48 = vld [vmem:[#allocation27_spill] sm:$0xff] }
  0xf2   :  { %969 = vmatmul.mubr.f32.vlgmr.msra.gmra.mxu1 %v2356_v14 }
  0xf3   :  { %1615 = vmatpush3.msra.mxu1 %v1910_v61  ;;  %v728_v59 = vand.u32 4294901760, %v727_v3  ;;  %v735_v13 = vsub.f32 %v2359_v27, %v734_v8 }
  0xf4   :  { %1616 = vmatprep.subr.mxu1 %v1914_v62 }
  0xf5   :  { %1617 = vmatpush3.msra.mxu1 %v1917_v63  ;;  %1211 = vmatprep.mubr.f32.mxu1 %v728_v59  ;;  %v729_v46 = vsub.f32 %v727_v3, %v728_v59  ;;  %v736_v42 = vand.u32 4294901760, %v735_v13  ;;  %v2668_v59 = vld [vmem:[#allocation5_spill] sm:$0xff] }
  0xf6   :  { %1618 = vmatprep.subr.mxu1 %v1990_v11  ;;  %v2669_v13 = vld [vmem:[#allocation17_spill] sm:$0xff] }
  0xf7   :  { %1619 = vmatpush3.msra.mxu1 %v1995_v16  ;;  %v730_v36 = vand.u32 4294901760, %v729_v46  ;;  %v2670_v46 = vld [vmem:[#allocation19_spill] sm:$0xff] }
  0xf8   :  { %1620 = vmatprep.subr.mxu1 %v2003_v22 }
  0xf9   :  { %1621 = vmatpush3.msra.mxu1 %v2012_v25  ;;  %731 = vmatprep.mubr.f32.mxu0 %v730_v36  ;;  %v2671_v36 = vld [vmem:[#allocation23_spill] sm:$0xff] }
  0xfa   :  { %1622 = vmatprep.subr.mxu1 %v2022_v29  ;;  %737 = vmatmul.mubr.f32.vlgmr.msra.gmra.mxu0 %v736_v42  ;;  %v2672_v42 = vld [vmem:[#allocation24_spill] sm:$0xff] }
  0xfb   :  { %1580 = vmatpush3.msra.mxu0 %v1928_v1  ;;  %1623 = vmatpush3.msra.mxu1 %v2032_v33 }
  0xfc   :  { %1581 = vmatprep.subr.mxu0 %v1934_v2  ;;  %1104 = vmatprep.mubr.f32.mxu0 %v727_v3  ;;  %v2667_v3 = vld [vmem:[#allocation16_spill] sm:$0xff] }
  0xfd   :  { %1624 = vmatprep.subr.mxu1 %v2053_v41  ;;  %1582 = vmatpush3.msra.mxu0 %v1940_v6 }
  0xfe   :  { %1625 = vmatpush3.msra.mxu1 %v2083_v55  ;;  %1583 = vmatprep.subr.mxu0 %v2001_v21 }
  0xff   :  { %1626 = vmatprep.subr.mxu1 %v2085_v56  ;;  %1584 = vmatpush3.msra.mxu0 %v2010_v24 }
 0x100   :  { %1627 = vmatpush3.msra.mxu1 %v2094_v17  ;;  %1585 = vmatprep.subr.mxu0 %v2020_v28 }
 0x101   :  { %1628 = vmatprep.subr.mxu1 %v2105_v20  ;;  %1586 = vmatpush3.msra.mxu0 %v2030_v32 }
 0x102   :  { %1629 = vmatpush3.msra.mxu1 %v2117_v23  ;;  %1587 = vmatprep.subr.mxu0 %v2043_v37 }
 0x103   :  { %1630 = vmatprep.subr.mxu1 %v2125_v35  ;;  %1588 = vmatpush3.msra.mxu0 %v2051_v40 }
 0x104   :  { %1631 = vmatpush3.msra.mxu1 %v2135_v45  ;;  %1589 = vmatprep.subr.mxu0 %v2074_v51 }
 0x105   :  { %1632 = vmatprep.subr.mxu1 %v2156_v58  ;;  %1590 = vmatpush3.msra.mxu0 %v2100_v19 }
 0x106   :  { %1633 = vmatpush3.msra.mxu1 %v2187_v15  ;;  %1591 = vmatprep.subr.mxu0 %v2103_v5 }
 0x107   :  { %1634 = vmatprep.subr.mxu1 %v2189_v54  ;;  %1592 = vmatpush3.msra.mxu0 %v2115_v18 }
 0x108   :  { %1635 = vmatpush3.msra.mxu1 %v2198_v12  ;;  %1593 = vmatprep.subr.mxu0 %v2123_v34 }
 0x109   :  { %1636 = vmatprep.subr.mxu1 %v2209_v30  ;;  %1594 = vmatpush3.msra.mxu0 %v2133_v44 }
 0x10a   :  { %1637 = vmatpush3.msra.mxu1 %v2221_v53  ;;  %1595 = vmatprep.subr.mxu0 %v2146_v52 }
 0x10b   :  { %1638 = vmatprep.subr.mxu1 %v2652_v39  ;;  %1596 = vmatpush3.msra.mxu0 %v2653_v10 }
 0x10c   :  { %1639 = vmatpush3.msra.mxu1 %v2654_v60  ;;  %1597 = vmatprep.subr.mxu0 %v2655_v57 }
 0x10d   :  { %1640 = vmatprep.subr.mxu1 %v2656_v9  ;;  %1598 = vmatpush3.msra.mxu0 %v2657_v7 }
 0x10e   :  { %1641 = vmatpush3.msra.mxu1 %v2658_v43  ;;  %1599 = vmatprep.subr.mxu0 %v2659_v49 }
 0x10f   :  { %1642 = vmatprep.subr.mxu1 %v2660_v4  ;;  %1600 = vmatpush3.msra.mxu0 %v2661_v47 }
 0x110   :  { %1643 = vmatpush3.msra.mxu1 %v2662_v38  ;;  %1601 = vmatprep.subr.mxu0 %v2663_v26 }
 0x111   :  { %1644 = vmatprep.subr.mxu1 %v2664_v0  ;;  %1602 = vmatpush3.msra.mxu0 %v2665_v31 }
 0x112   :  { %1645 = vmatpush3.msra.mxu1 %v2666_v48  ;;  %1603 = vmatprep.subr.mxu0 %v2667_v3 }
 0x113   :  { %1215 = vmatmul.mubr.f32.vlgmr.msra.gmra.mxu1 %v734_v8  ;;  %1684 = vmatprep.subr.mxu1 %v2668_v59  ;;  %v2673_v8 = vld [vmem:[#allocation26_spill] sm:$0xff]  ;;  %v2674_v59 = vld [vmem:[#allocation28_spill] sm:$0xff] }
 0x114   :  { %1604 = vmatpush3.msra.mxu0 %v2669_v13  ;;  %1685 = vmatpush3.msra.mxu1 %v1910_v61  ;;  %v2675_v61 = vld [vmem:[#allocation29_spill] sm:$0xff] }
 0x115   :  { %1485 = vmatprep.mubr.f32.mxu1 %v2361_v50  ;;  %1605 = vmatprep.subr.mxu0 %v2670_v46 }
 0x116   :  { %1686 = vmatprep.subr.mxu1 %v1914_v62  ;;  %1606 = vmatpush3.msra.mxu0 %v2671_v36  ;;  %v2676_v62 = vld [vmem:[#allocation6_spill] sm:$0xff] }
 0x117   :  { %1687 = vmatpush3.msra.mxu1 %v1917_v63  ;;  %1607 = vmatprep.subr.mxu0 %v2672_v42  ;;  %v2677_v63 = vand.u32 4294901760, %v2676_v62 }
 0x118   :  { %1688 = vmatprep.subr.mxu1 %v1990_v11  ;;  %1608 = vmatpush3.msra.mxu0 %v2673_v8  ;;  %v2678_v11 = vand.u32 4294901760, %v1928_v1  ;;  %v2682_v1 = vand.u32 4294901760, %v2010_v24  ;;  %v2686_v24 = vand.u32 4294901760, %v2051_v40  ;;  %v2692_v40 = vand.u32 4294901760, %v2133_v44 }
 0x119   :  { %1689 = vmatpush3.msra.mxu1 %v1995_v16  ;;  %1609 = vmatprep.subr.mxu0 %v2674_v59  ;;  %v2679_v16 = vand.u32 4294901760, %v1934_v2  ;;  %v2683_v2 = vand.u32 4294901760, %v2020_v28  ;;  %v2687_v28 = vand.u32 4294901760, %v2074_v51  ;;  %v2694_v51 = vand.u32 4294901760, %v2653_v10 }
 0x11a   :  { %1690 = vmatprep.subr.mxu1 %v2003_v22  ;;  %1610 = vmatpush3.msra.mxu0 %v2675_v61  ;;  %v2680_v22 = vand.u32 4294901760, %v1940_v6  ;;  %v2684_v6 = vand.u32 4294901760, %v2030_v32  ;;  %v2689_v32 = vand.u32 4294901760, %v2103_v5  ;;  %v2700_v5 = vand.u32 4294901760, %v2665_v31 }
 0x11b   :  { %1691 = vmatpush3.msra.mxu1 %v2012_v25  ;;  %1107 = vmatmul.mubr.f32.vlgmr.msra.gmra.mxu0 %v2359_v27  ;;  %v2681_v25 = vand.u32 4294901760, %v2001_v21  ;;  %v2685_v21 = vand.u32 4294901760, %v2043_v37  ;;  %v2691_v37 = vand.u32 4294901760, %v2123_v34  ;;  %v2704_v34 = vand.u32 4294901760, %v2671_v36 }
 0x11c   :  { %1649 = vmatprep.subr.mxu0 %v2677_v63  ;;  %1692 = vmatprep.subr.mxu1 %v2022_v29  ;;  %v2688_v29 = vand.u32 4294901760, %v2100_v19  ;;  %v2699_v19 = vand.u32 4294901760, %v2663_v26  ;;  %v2706_v44 = vand.u32 4294901760, %v2673_v8 }
 0x11d   :  { %1650 = vmatpush3.msra.mxu0 %v2678_v11  ;;  %1381 = vmatprep.mubr.f32.mxu0 %v2361_v50  ;;  %v1508_v50 = vld [vmem:[%s2545_s4] ss:$0 sm:$0xff]  ;;  %s1721_s4 = scalar_lea.vmem %s1501_s22, 128 }
 0x11e   :  { %1693 = vmatpush3.msra.mxu1 %v2032_v33  ;;  %1651 = vmatprep.subr.mxu0 %v2679_v16  ;;  %v2690_v33 = vand.u32 4294901760, %v2115_v18  ;;  %v2702_v18 = vand.u32 4294901760, %v2669_v13  ;;  %p1722_p0 = scmp.ne.s32.totalorder %s1501_s22, %s1721_s4  ;;  %p1727_p2 = scmp.lt.s32.totalorder %s1721_s4, %s1721_s4 }
 0x11f   :  { %1694 = vmatprep.subr.mxu1 %v2053_v41  ;;  %1652 = vmatpush3.msra.mxu0 %v2680_v22  ;;  %v2693_v41 = vand.u32 4294901760, %v2146_v52  ;;  %v2708_v52 = vand.u32 4294901760, %v2675_v61 }
 0x120   :  { %1695 = vmatpush3.msra.mxu1 %v2083_v55  ;;  %1653 = vmatprep.subr.mxu0 %v2681_v25  ;;  %v2695_v55 = vand.u32 4294901760, %v2655_v57  ;;  %p1728_p3 = por %p1727_p2, %p1726_p1 }
 0x121   :  { %1696 = vmatprep.subr.mxu1 %v2085_v56  ;;  %1654 = vmatpush3.msra.mxu0 %v2682_v1  ;;  %v2696_v56 = vand.u32 4294901760, %v2657_v7 }
 0x122   :  { %1697 = vmatpush3.msra.mxu1 %v2094_v17  ;;  %1655 = vmatprep.subr.mxu0 %v2683_v2  ;;  %v2698_v17 = vand.u32 4294901760, %v2661_v47  ;;  %p1729_p4 = pnand %p1728_p3, %p1722_p0 }
 0x123   :  { %1698 = vmatprep.subr.mxu1 %v2105_v20  ;;  %1656 = vmatpush3.msra.mxu0 %v2684_v6  ;;  %v2701_v20 = vand.u32 4294901760, %v2667_v3 }
 0x124   :  { %1699 = vmatpush3.msra.mxu1 %v2117_v23  ;;  %1657 = vmatprep.subr.mxu0 %v2685_v21  ;;  %v2703_v23 = vand.u32 4294901760, %v2670_v46 }
 0x125   :  { %1700 = vmatprep.subr.mxu1 %v2125_v35  ;;  %1658 = vmatpush3.msra.mxu0 %v2686_v24  ;;  %v2705_v35 = vand.u32 4294901760, %v2672_v42 }
 0x126   :  { %1701 = vmatpush3.msra.mxu1 %v2135_v45  ;;  %1659 = vmatprep.subr.mxu0 %v2687_v28  ;;  %v2707_v45 = vand.u32 4294901760, %v2674_v59 }
 0x127   :  { %1702 = vmatprep.subr.mxu1 %v2156_v58  ;;  %1660 = vmatpush3.msra.mxu0 %v2688_v29 }
 0x128   :  { %1703 = vmatpush3.msra.mxu1 %v2187_v15  ;;  %1661 = vmatprep.subr.mxu0 %v2689_v32  ;;  %v2697_v15 = vand.u32 4294901760, %v2659_v49 }
 0x129   :  { %1704 = vmatprep.subr.mxu1 %v2189_v54  ;;  %1662 = vmatpush3.msra.mxu0 %v2690_v33 }
 0x12a   :  { %1705 = vmatpush3.msra.mxu1 %v2198_v12  ;;  %1663 = vmatprep.subr.mxu0 %v2691_v37 }
 0x12b   :  { %1706 = vmatprep.subr.mxu1 %v2209_v30  ;;  %1664 = vmatpush3.msra.mxu0 %v2692_v40 }
 0x12c   :  { %1707 = vmatpush3.msra.mxu1 %v2221_v53  ;;  %1665 = vmatprep.subr.mxu0 %v2693_v41 }
 0x12d   :  { %1708 = vmatprep.subr.mxu1 %v2652_v39  ;;  %1666 = vmatpush3.msra.mxu0 %v2694_v51 }
 0x12e   :  { %1709 = vmatpush3.msra.mxu1 %v2654_v60  ;;  %1667 = vmatprep.subr.mxu0 %v2695_v55 }
 0x12f   :  { %1710 = vmatprep.subr.mxu1 %v2656_v9  ;;  %1668 = vmatpush3.msra.mxu0 %v2696_v56 }
 0x130   :  { %1711 = vmatpush3.msra.mxu1 %v2658_v43  ;;  %1669 = vmatprep.subr.mxu0 %v2697_v15 }
 0x131   :  { %1712 = vmatprep.subr.mxu1 %v2660_v4  ;;  %1670 = vmatpush3.msra.mxu0 %v2698_v17 }
 0x132   :  { %1713 = vmatpush3.msra.mxu1 %v2662_v38  ;;  %1671 = vmatprep.subr.mxu0 %v2699_v19 }
 0x133   :  { %1714 = vmatprep.subr.mxu1 %v2664_v0  ;;  %1672 = vmatpush3.msra.mxu0 %v2700_v5 }
 0x134   :  { %1715 = vmatpush3.msra.mxu1 %v2666_v48  ;;  %1673 = vmatprep.subr.mxu0 %v2701_v20 }
 0x135   :  { %1487 = vmatmul.mubr.f32.vlgmr.msra.gmra.mxu1 %v2356_v14  ;;  %1674 = vmatpush3.msra.mxu0 %v2702_v18 }
 0x136   :  { %1675 = vmatprep.subr.mxu0 %v2703_v23 }
 0x137   :  { %1676 = vmatpush3.msra.mxu0 %v2704_v34 }
 0x138   :  { %1677 = vmatprep.subr.mxu0 %v2705_v35 }
 0x139   :  { %1678 = vmatpush3.msra.mxu0 %v2706_v44 }
 0x13a   :  { %1679 = vmatprep.subr.mxu0 %v2707_v45 }
 0x13b   :  { %1680 = vmatpush3.msra.mxu0 %v2708_v52 }
 0x13c   :  { %1383 = vmatmul.mubr.f32.vlgmr.msra.gmra.mxu0 %v2356_v14 }
 0x1b2   :  { %v1576_v58 = vpop.f32.mrf.mxu1 }
 0x1b4   :  { %v1577_v27 = vpop.f32.mrf.mxu1 }
 0x1b5   :  { %v1578_v57 = vadd.f32 %v1577_v27, %v1576_v58 }
 0x1ba   :  { %v1541_v54 = vpop.f32.mrf.mxu0 }
 0x1bc   :  { %v1542_v12 = vpop.f32.mrf.mxu0 }
 0x1bd   :  { %v1543_v53 = vadd.f32 %v1542_v12, %v1541_v54 }
 0x1bf   :  { %v739_v60 = vadd.f32 %v1543_v53, %v1508_v50 }
 0x1c1   :  { %v971_v43 = vadd.f32 %v1578_v57, %v739_v60 }
 0x1d3   :  { %v1646_v39 = vpop.f32.mrf.mxu1 }
 0x1d5   :  { %v1647_v7 = vpop.f32.mrf.mxu1 }
 0x1d6   :  { %v1648_v47 = vadd.f32 %v1647_v7, %v1646_v39 }
 0x1db   :  { %v1611_v30 = vpop.f32.mrf.mxu0 }
 0x1dd   :  { %v1612_v10 = vpop.f32.mrf.mxu0 }
 0x1de   :  { %v1613_v9 = vadd.f32 %v1612_v10, %v1611_v30 }
 0x1e0   :  { %v1109_v4 = vadd.f32 %v1613_v9, %v971_v43 }
 0x1e2   :  { %v1217_v0 = vadd.f32 %v1648_v47, %v1109_v4 }
 0x1f5   :  { %v1716_v49 = vpop.f32.mrf.mxu1 }
 0x1f7   :  { %v1717_v38 = vpop.f32.mrf.mxu1 }
 0x1f8   :  { %v1718_v48 = vadd.f32 %v1717_v38, %v1716_v49 }
 0x1fc   :  { %v1681_v14 = vpop.f32.mrf.mxu0 }
 0x1fe   :  { %v1682_v26 = vpop.f32.mrf.mxu0 }
 0x1ff   :  { %v1683_v31 = vadd.f32 %v1682_v26, %v1681_v14 }
 0x201   :  { %v1385_v3 = vadd.f32 %v1683_v31, %v1217_v0 }
 0x203   :  { %v1489_v13 = vadd.f32 %v1718_v48, %v1385_v3 }
 0x205   :  { %1493 = vst.msk [vmem:[#allocation2] sm:$0xff] %vm1492_vm1, %v1489_v13 }
 0x206   :  { %1732 = shalt.err (!%p1729_p4)
}
 0x207   :  { %1503 = dma.vmem_to_hbm [thread:$0]  %s1501_s22, 128, %s2546_s5, [#allocation3]  }
 0x208   :  { %1741 = dma.done.wait [#allocation3], 128  }
 0x209   :  { %1742 = vsyncadd [#allocation3], 4294967168 }
 0x20a   :  { %1507 = vsyncpa [#allocation3], 1 }

</bundles_post_ra>
